<compile_context>
chip_gen: v6e
topology: v6e:2x2x1
jax: 0.10.0
libtpu: 0.0.40
codegen_flags: <defaults>
</compile_context>

<pallas_src>
import jax
import jax.numpy as jnp
from jax import lax
from jax.experimental import pallas as pl
from jax.experimental.pallas import tpu as pltpu


# --------------------------------------------------------------------------
# Kernel 1: circular-padded 3-tap Conv1d as MXU matmuls + BN partial stats.
# --------------------------------------------------------------------------
def _conv_stats_kernel(xp_ref, w_ref, conv_ref, stats_ref):
    """One tile of Bt lane-packed batch rows.

    xp_ref:    (Bt, L+4, GC) circular-padded, lane-packed input (matmul dtype)
    w_ref:     (3, GC, GC)   tap-major, block-diagonal conv weights
    conv_ref:  (Bt, Lc, GC)  conv output (bias dropped; BN cancels it)
    stats_ref: (2, GC) f32   [sum; sum-of-squares] over this tile's Bt*Lc rows
    """
    bt, _, gc = xp_ref.shape
    lc = conv_ref.shape[1]
    x = xp_ref[...]
    # Three MXU matmuls (one per conv tap); M = Bt*Lc so each push does real
    # work, K = N = GC (128 for the module's d_model = 32).  f32 accumulation.
    acc = jnp.dot(x[:, 0:lc, :].reshape(bt * lc, gc), w_ref[0],
                  preferred_element_type=jnp.float32)
    acc = acc + jnp.dot(x[:, 1:lc + 1, :].reshape(bt * lc, gc), w_ref[1],
                        preferred_element_type=jnp.float32)
    acc = acc + jnp.dot(x[:, 2:lc + 2, :].reshape(bt * lc, gc), w_ref[2],
                        preferred_element_type=jnp.float32)
    conv_ref[...] = acc.reshape(bt, lc, gc).astype(conv_ref.dtype)

    # One-pass BatchNorm partial statistics for this tile (reduced across tiles
    # in the wrapper).  Two slice stores — no concatenate.
    stats_ref[0:1, :] = jnp.sum(acc, axis=0, keepdims=True)
    stats_ref[1:2, :] = jnp.sum(acc * acc, axis=0, keepdims=True)


# --------------------------------------------------------------------------
# Kernel 2: folded BatchNorm affine + ELU + MaxPool1d(k=3, s=2, p=1).
# --------------------------------------------------------------------------
def _bn_elu_pool_kernel(conv_ref, scale_ref, shift_ref, out_ref):
    """One tile of Bt lane-packed batch rows.

    conv_ref:  (Bt, Lc, GC) conv output (bf16 or f32; upcast before any math)
    scale_ref: (1, GC) = gamma / sqrt(var + eps)       (tiled over the G groups)
    shift_ref: (1, GC) = beta - mean * scale
    out_ref:   (Bt, Lp, GC) f32
    """
    bt, lc, gc = conv_ref.shape
    lp = out_ref.shape[1]
    scale = scale_ref[...].astype(jnp.float32)
    shift = shift_ref[...].astype(jnp.float32)

    y = conv_ref[...].astype(jnp.float32) * scale + shift
    # ELU(alpha=1); the min() keeps exp() out of overflow on the dead branch.
    y = jnp.where(y > 0.0, y, jnp.exp(jnp.minimum(y, 0.0)) - 1.0)

    # MaxPool1d(k=3, s=2, p=1): window t covers rows {2t-1, 2t, 2t+1}; the pad
    # only drops out-of-range rows, so no pad constant is needed at all.
    half = lc // 2
    r = y[:, 0:2 * half, :].reshape(bt, half, 2, gc)
    e = r[:, :, 0, :]                       # y[2t]
    o = r[:, :, 1, :]                       # y[2t+1]
    q = jnp.maximum(e, o)                   # max(y[2t], y[2t+1])
    dt = out_ref.dtype

    out_ref[:, 0:1, :] = q[:, 0:1, :].astype(dt)
    if lc % 2 == 0:                         # half == lp
        out_ref[:, 1:lp, :] = jnp.maximum(
            q[:, 1:lp, :], o[:, 0:lp - 1, :]).astype(dt)
    else:                                   # half == lp - 1; last window is
        out_ref[:, 1:half, :] = jnp.maximum(          # {y[lc-2], y[lc-1]}
            q[:, 1:half, :], o[:, 0:half - 1, :]).astype(dt)
        out_ref[:, half:lp, :] = jnp.maximum(
            y[:, lc - 1:lc, :], o[:, half - 1:half, :]).astype(dt)


# --------------------------------------------------------------------------
# Wrapper
# --------------------------------------------------------------------------
def _vmem_limit_bytes(io_bytes, temp_bytes):
    # Double-buffered per-step tiles + in-kernel f32 temps + headroom, capped
    # at 32 MiB (safe on v5e/v6e 128 MiB physical VMEM and v7x's 64 MiB).
    est = 2 * io_bytes + temp_bytes + (2 << 20)
    return int(min(max(est, 8 << 20), 32 << 20))


def self_attention_distil(x_blc, conv_w, conv_b, bn_gamma, bn_beta,
                          *, matmul_dtype=jnp.bfloat16, bt_target=16):
    """SelfAttentionDistil forward.

    x_blc: (B, L, C) f32; conv_w: (C_out, C_in, 3); conv_b/bn_gamma/bn_beta: (C,).
    Returns (B, Lp, C) f32 — already in the PyTorch output layout.
    """
    B, L, C = x_blc.shape
    if L < 2:
        raise ValueError("circular padding of 2 requires L >= 2")
    Lc, Lpad = L + 2, L + 4       # Conv1d output / circular-padded input length
    Lp = (Lc - 1) // 2 + 1        # MaxPool1d(k=3, s=2, p=1) output length
    del conv_b  # BatchNorm subtracts the batch mean -> conv bias cancels exactly.

    # ---- lane packing: G batch rows side by side on the lane axis ----------
    G = max(1, 128 // C)          # C=32 (d_model default) -> G=4, GC=128 lanes
    GC = G * C
    Bp0 = pl.cdiv(B, G)           # packed rows before tiling pad
    # >=2 grid steps when possible so "parallel" shards across v7x's two TCs.
    nsteps = max(2, pl.cdiv(Bp0, bt_target)) if Bp0 >= 2 else 1
    Bt = pl.cdiv(Bp0, nsteps)     # packed rows per grid step
    nBT = pl.cdiv(Bp0, Bt)
    Bp = nBT * Bt
    Bfull = Bp * G

    # Circular pad along length in HBM; zero-pad batch up to the packed tile
    # size (zero rows contribute 0 to the BN sums since the bias is dropped).
    xw = jnp.pad(x_blc.astype(jnp.float32), ((0, 0), (2, 2), (0, 0)), mode="wrap")
    if Bfull > B:
        xw = jnp.pad(xw, ((0, Bfull - B), (0, 0), (0, 0)))
    xpacked = (xw.reshape(Bp, G, Lpad, C).transpose(0, 2, 1, 3)
                 .reshape(Bp, Lpad, GC).astype(matmul_dtype))

    # (C_out, C_in, 3) -> tap-major (3, C_in, C_out); block-diag over G groups.
    w_taps = jnp.transpose(conv_w.astype(jnp.float32), (2, 1, 0))
    if G > 1:
        eye = jnp.eye(G, dtype=jnp.float32)
        w_taps = jax.vmap(lambda m: jnp.kron(eye, m))(w_taps)    # (3, GC, GC)
    w_bd = w_taps.astype(matmul_dtype)

    inter_dtype = matmul_dtype    # bf16 intermediate halves the HBM round trip
    itm = jnp.dtype(matmul_dtype).itemsize
    iti = jnp.dtype(inter_dtype).itemsize

    io1 = Bt * Lpad * GC * itm + 3 * GC * GC * itm + Bt * Lc * GC * iti + 2 * GC * 4
    conv_out, stats = pl.pallas_call(
        _conv_stats_kernel,
        out_shape=(jax.ShapeDtypeStruct((Bp, Lc, GC), inter_dtype),
                   jax.ShapeDtypeStruct((nBT, 2, GC), jnp.float32)),
        grid=(nBT,),
        in_specs=[
            pl.BlockSpec((Bt, Lpad, GC), lambda t: (t, 0, 0)),
            pl.BlockSpec((3, GC, GC), lambda t: (0, 0, 0)),
        ],
        out_specs=(
            pl.BlockSpec((Bt, Lc, GC), lambda t: (t, 0, 0)),
            pl.BlockSpec((None, 2, GC), lambda t: (t, 0, 0)),
        ),
        compiler_params=pltpu.CompilerParams(
            dimension_semantics=("parallel",),
            vmem_limit_bytes=_vmem_limit_bytes(io1, 4 * Bt * Lc * GC * 4),
        ),
    )(xpacked, w_bd)

    # BatchNorm1d (training mode): batch statistics over the real (B, Lc) rows,
    # biased variance, eps=1e-5; fold gamma/beta into per-channel scale+shift.
    n = jnp.float32(B * Lc)
    tot = jnp.sum(stats, axis=0).reshape(2, G, C).sum(axis=1)    # (2, C)
    mean = tot[0] / n
    var = jnp.maximum(tot[1] / n - mean * mean, 0.0)             # guard tiny neg
    scale_c = bn_gamma.astype(jnp.float32) * lax.rsqrt(var + 1e-5)
    shift_c = bn_beta.astype(jnp.float32) - mean * scale_c
    scale = jnp.tile(scale_c, G).reshape(1, GC)
    shift = jnp.tile(shift_c, G).reshape(1, GC)

    io2 = Bt * Lc * GC * iti + 2 * GC * 4 + Bt * Lp * GC * 4
    out_packed = pl.pallas_call(
        _bn_elu_pool_kernel,
        out_shape=jax.ShapeDtypeStruct((Bp, Lp, GC), jnp.float32),
        grid=(nBT,),
        in_specs=[
            pl.BlockSpec((Bt, Lc, GC), lambda t: (t, 0, 0)),
            pl.BlockSpec((1, GC), lambda t: (0, 0)),
            pl.BlockSpec((1, GC), lambda t: (0, 0)),
        ],
        out_specs=pl.BlockSpec((Bt, Lp, GC), lambda t: (t, 0, 0)),
        compiler_params=pltpu.CompilerParams(
            dimension_semantics=("parallel",),
            vmem_limit_bytes=_vmem_limit_bytes(io2, 6 * Bt * Lc * GC * 4),
        ),
    )(conv_out, scale, shift)

    # Unpack lanes back to (B, Lp, C) and drop the zero-padded batch rows.
    out = (out_packed.reshape(Bp, Lp, G, C).transpose(0, 2, 1, 3)
                     .reshape(Bfull, Lp, C))[:B]
    return out


# --------------------------------------------------------------------------
# Pure-JAX reference mirroring the PyTorch forward semantics (incl. conv bias,
# two-pass variance, -inf pool padding) for validation.
# --------------------------------------------------------------------------
def reference(x_blc, conv_w, conv_b, bn_gamma, bn_beta):
    xt = jnp.transpose(x_blc, (0, 2, 1)).astype(jnp.float32)          # (B, C, L)
    B, C, L = xt.shape
    Lc = L + 2
    xpad = jnp.pad(xt, ((0, 0), (0, 0), (2, 2)), mode="wrap")
    y = conv_b[None, :, None].astype(jnp.float32)
    for k in range(3):
        y = y + jnp.einsum("oc,bcl->bol", conv_w[:, :, k].astype(jnp.float32),
                           xpad[:, :, k:k + Lc],
                           precision=jax.lax.Precision.HIGHEST)
    mean = jnp.mean(y, axis=(0, 2), keepdims=True)
    var = jnp.mean((y - mean) ** 2, axis=(0, 2), keepdims=True)
    y = (y - mean) / jnp.sqrt(var + 1e-5)
    y = y * bn_gamma[None, :, None] + bn_beta[None, :, None]
    y = jax.nn.elu(y)
    yp = jnp.pad(y, ((0, 0), (0, 0), (1, 1)), constant_values=-jnp.inf)
    Lp = (Lc - 1) // 2 + 1
    out = jnp.stack(
        [jnp.max(yp[:, :, 2 * t:2 * t + 3], axis=-1) for t in range(Lp)], axis=-1)
    return jnp.transpose(out, (0, 2, 1))                              # (B, Lp, C)


if __name__ == "__main__":
    def make_inputs(B, L, C, key):
        k1, k2, k3 = jax.random.split(key, 3)
        x = jax.random.normal(k1, (B, L, C), jnp.float32)
        fan_in = C * 3
        bound = 1.0 / (fan_in ** 0.5)
        conv_w = jax.random.uniform(k2, (C, C, 3), jnp.float32, -bound, bound)
        conv_b = jax.random.uniform(k3, (C,), jnp.float32, -bound, bound)
        bn_gamma = jnp.ones((C,), jnp.float32)   # BatchNorm1d default affine
        bn_beta = jnp.zeros((C,), jnp.float32)
        return x, conv_w, conv_b, bn_gamma, bn_beta

    key = jax.random.PRNGKey(0)
    kA, kB, kC = jax.random.split(key, 3)

    # d_model = 32 (transformer module default); B not a multiple of the
    # lane-pack group exercises the batch zero-padding path.
    B, L, C = 2, 12, 32
    args = make_inputs(B, L, C, kA)
    ref = reference(*args)
    Lp = (L + 2 - 1) // 2 + 1
    assert ref.shape == (B, Lp, C), ref.shape

    # Default bf16 MXU path (perf path); bf16 operands -> loose tolerance.
    out_bf16 = jax.block_until_ready(self_attention_distil(*args))
    assert out_bf16.shape == (B, Lp, C), out_bf16.shape
    assert jnp.allclose(out_bf16, ref, atol=5e-2, rtol=5e-2), \
        float(jnp.max(jnp.abs(out_bf16 - ref)))

    # f32 operand path: tight structural check (BN, ELU, pooling windows).
    out_f32 = jax.block_until_ready(
        self_attention_distil(*args, matmul_dtype=jnp.float32))
    assert jnp.allclose(out_f32, ref, atol=5e-3, rtol=5e-3), \
        float(jnp.max(jnp.abs(out_f32 - ref)))

    # Odd conv-output length (L + 2 odd) + two-step parallel grid.
    B2, L2, C2 = 6, 9, 32
    args2 = make_inputs(B2, L2, C2, kB)
    ref2 = reference(*args2)
    out2 = jax.block_until_ready(
        self_attention_distil(*args2, matmul_dtype=jnp.float32))
    assert out2.shape == ref2.shape, (out2.shape, ref2.shape)
    assert jnp.allclose(out2, ref2, atol=5e-3, rtol=5e-3), \
        float(jnp.max(jnp.abs(out2 - ref2)))

    # Larger batch: >=2 grid steps with Bt > 1 packed rows per step.
    B3, L3, C3 = 16, 20, 32
    args3 = make_inputs(B3, L3, C3, kC)
    ref3 = reference(*args3)
    out3 = jax.block_until_ready(
        self_attention_distil(*args3, matmul_dtype=jnp.float32))
    assert out3.shape == ref3.shape, (out3.shape, ref3.shape)
    assert jnp.allclose(out3, ref3, atol=5e-3, rtol=5e-3), \
        float(jnp.max(jnp.abs(out3 - ref3)))

    print("KERNEL_OK")
</pallas_src>

<mosaic_0001>
module attributes {stable_mosaic.version = 11 : i64} {
  func.func @_conv_stats_kernel(%arg0: i32, %arg1: memref<1x16x128xbf16, #tpu.memory_space<vmem>>, %arg2: memref<3x128x128xbf16, #tpu.memory_space<vmem>>, %arg3: memref<1x14x128xbf16, #tpu.memory_space<vmem>>, %arg4: memref<1x2x128xf32, #tpu.memory_space<vmem>>) attributes {dimension_semantics = [#tpu.dimension_semantics<parallel>], iteration_bounds = array<i64: 1>, scalar_prefetch = 0 : i64, scratch_operands = 0 : i64, tpu.core_type = #tpu.core_type<tc>, window_params = [{transform_indices = @transform_0, window_bounds = array<i64: 1, 16, 128>}, {pipeline_mode = #tpu.pipeline_mode<synchronous>, transform_indices = @transform_1, window_bounds = array<i64: 3, 128, 128>}, {transform_indices = @transform_2, window_bounds = array<i64: 1, 14, 128>}, {transform_indices = @transform_3, window_bounds = array<i64: 1, 2, 128>}]} {
    %c0 = arith.constant 0 : index
    %c0_0 = arith.constant 0 : index
    %c0_1 = arith.constant 0 : index
    %0 = vector.load %arg1[%c0, %c0_0, %c0_1] : memref<1x16x128xbf16, #tpu.memory_space<vmem>>, vector<1x16x128xbf16>
    %1 = vector.extract_strided_slice %0 {offsets = [0, 0, 0], sizes = [1, 14, 128], strides = [1, 1, 1]} : vector<1x16x128xbf16> to vector<1x14x128xbf16>
    %2 = vector.shape_cast %1 : vector<1x14x128xbf16> to vector<14x128xbf16>
    %c0_2 = arith.constant 0 : index
    %c0_3 = arith.constant 0 : index
    %c0_4 = arith.constant 0 : index
    %3 = vector.load %arg2[%c0_2, %c0_3, %c0_4] : memref<3x128x128xbf16, #tpu.memory_space<vmem>>, vector<1x128x128xbf16>
    %4 = vector.shape_cast %3 : vector<1x128x128xbf16> to vector<128x128xbf16>
    %cst = arith.constant dense<0.000000e+00> : vector<14x128xf32>
    %5 = tpu.matmul %2, %4, %cst {dimension_numbers = #tpu.dot_dimension_numbers<[1], [0], [0], [1], [0, 0, 1, 1], [], []>} : vector<14x128xbf16>, vector<128x128xbf16>, vector<14x128xf32> -> vector<14x128xf32>
    %6 = vector.extract_strided_slice %0 {offsets = [0, 1, 0], sizes = [1, 14, 128], strides = [1, 1, 1]} : vector<1x16x128xbf16> to vector<1x14x128xbf16>
    %7 = vector.shape_cast %6 : vector<1x14x128xbf16> to vector<14x128xbf16>
    %c1 = arith.constant 1 : index
    %c0_5 = arith.constant 0 : index
    %c0_6 = arith.constant 0 : index
    %8 = vector.load %arg2[%c1, %c0_5, %c0_6] : memref<3x128x128xbf16, #tpu.memory_space<vmem>>, vector<1x128x128xbf16>
    %9 = vector.shape_cast %8 : vector<1x128x128xbf16> to vector<128x128xbf16>
    %cst_7 = arith.constant dense<0.000000e+00> : vector<14x128xf32>
    %10 = tpu.matmul %7, %9, %cst_7 {dimension_numbers = #tpu.dot_dimension_numbers<[1], [0], [0], [1], [0, 0, 1, 1], [], []>} : vector<14x128xbf16>, vector<128x128xbf16>, vector<14x128xf32> -> vector<14x128xf32>
    %11 = arith.addf %5, %10 : vector<14x128xf32>
    %12 = vector.extract_strided_slice %0 {offsets = [0, 2, 0], sizes = [1, 14, 128], strides = [1, 1, 1]} : vector<1x16x128xbf16> to vector<1x14x128xbf16>
    %13 = vector.shape_cast %12 : vector<1x14x128xbf16> to vector<14x128xbf16>
    %c2 = arith.constant 2 : index
    %c0_8 = arith.constant 0 : index
    %c0_9 = arith.constant 0 : index
    %14 = vector.load %arg2[%c2, %c0_8, %c0_9] : memref<3x128x128xbf16, #tpu.memory_space<vmem>>, vector<1x128x128xbf16>
    %15 = vector.shape_cast %14 : vector<1x128x128xbf16> to vector<128x128xbf16>
    %cst_10 = arith.constant dense<0.000000e+00> : vector<14x128xf32>
    %16 = tpu.matmul %13, %15, %cst_10 {dimension_numbers = #tpu.dot_dimension_numbers<[1], [0], [0], [1], [0, 0, 1, 1], [], []>} : vector<14x128xbf16>, vector<128x128xbf16>, vector<14x128xf32> -> vector<14x128xf32>
    %17 = arith.addf %11, %16 : vector<14x128xf32>
    %18 = vector.shape_cast %17 : vector<14x128xf32> to vector<1x14x128xf32>
    %19 = arith.truncf %18 : vector<1x14x128xf32> to vector<1x14x128xbf16>
    %c0_11 = arith.constant 0 : index
    %c0_12 = arith.constant 0 : index
    %c0_13 = arith.constant 0 : index
    %20 = vector.load %arg3[%c0_11, %c0_12, %c0_13] : memref<1x14x128xbf16, #tpu.memory_space<vmem>>, vector<1x14x128xbf16>
    tpu.vector_store %arg3[%c0_11, %c0_12, %c0_13], %19 {strides = array<i32>} : memref<1x14x128xbf16, #tpu.memory_space<vmem>>, vector<1x14x128xbf16>,
    %cst_14 = arith.constant dense<0.000000e+00> : vector<128xf32>
    %21 = vector.multi_reduction <add>, %17, %cst_14 [0] : vector<14x128xf32> to vector<128xf32>
    %22 = vector.shape_cast %21 : vector<128xf32> to vector<1x128xf32>
    %c0_15 = arith.constant 0 : index
    %c0_16 = arith.constant 0 : index
    %c0_17 = arith.constant 0 : index
    %23 = vector.load %arg4[%c0_15, %c0_16, %c0_17] : memref<1x2x128xf32, #tpu.memory_space<vmem>>, vector<1x1x128xf32>
    %24 = vector.shape_cast %23 : vector<1x1x128xf32> to vector<1x128xf32>
    %25 = vector.shape_cast %22 : vector<1x128xf32> to vector<1x1x128xf32>
    tpu.vector_store %arg4[%c0_15, %c0_16, %c0_17], %25 {strides = array<i32>} : memref<1x2x128xf32, #tpu.memory_space<vmem>>, vector<1x1x128xf32>,
    %26 = arith.mulf %17, %17 : vector<14x128xf32>
    %cst_18 = arith.constant dense<0.000000e+00> : vector<128xf32>
    %27 = vector.multi_reduction <add>, %26, %cst_18 [0] : vector<14x128xf32> to vector<128xf32>
    %28 = vector.shape_cast %27 : vector<128xf32> to vector<1x128xf32>
    %c0_19 = arith.constant 0 : index
    %c1_20 = arith.constant 1 : index
    %c0_21 = arith.constant 0 : index
    %29 = vector.load %arg4[%c0_19, %c1_20, %c0_21] : memref<1x2x128xf32, #tpu.memory_space<vmem>>, vector<1x1x128xf32>
    %30 = vector.shape_cast %29 : vector<1x1x128xf32> to vector<1x128xf32>
    %31 = vector.shape_cast %28 : vector<1x128xf32> to vector<1x1x128xf32>
    tpu.vector_store %arg4[%c0_19, %c1_20, %c0_21], %31 {strides = array<i32>} : memref<1x2x128xf32, #tpu.memory_space<vmem>>, vector<1x1x128xf32>,
    return
  }
  func.func @transform_0(%arg0: i32) -> (i32, i32, i32) {
    %c0_i32 = arith.constant 0 : i32
    %c0_i32_0 = arith.constant 0 : i32
    %c0_i32_1 = arith.constant 0 : i32
    return %arg0, %c0_i32, %c0_i32_0 : i32, i32, i32
  }
  func.func @transform_1(%arg0: i32) -> (i32, i32, i32) {
    %c0_i32 = arith.constant 0 : i32
    %c0_i32_0 = arith.constant 0 : i32
    %c0_i32_1 = arith.constant 0 : i32
    %c0_i32_2 = arith.constant 0 : i32
    return %c0_i32, %c0_i32_0, %c0_i32_1 : i32, i32, i32
  }
  func.func @transform_2(%arg0: i32) -> (i32, i32, i32) {
    %c0_i32 = arith.constant 0 : i32
    %c0_i32_0 = arith.constant 0 : i32
    %c0_i32_1 = arith.constant 0 : i32
    return %arg0, %c0_i32, %c0_i32_0 : i32, i32, i32
  }
  func.func @transform_3(%arg0: i32) -> (i32, i32, i32) {
    %c0_i32 = arith.constant 0 : i32
    %c0_i32_0 = arith.constant 0 : i32
    %c0_i32_1 = arith.constant 0 : i32
    return %arg0, %c0_i32, %c0_i32_0 : i32, i32, i32
  }
}

</mosaic_0001>

<bundles_post_ra>
// kernel: tpu_custom_call.1
= control target key start
LH: loop header
LB: loop body
LE: loop exit
PB: predicated region body
PF: predicated region fallthrough
CT: control target
= control target key end

     0   :  { %9 = vsyncpa [#allocation3], 0  ;;  %s760_s0 = inlined_call_operand.hbm [shape: bf16[1,16,128], index: 0, kind: input, shape index: {}]   ;;  %s761_s1 = inlined_call_operand.hbm [shape: bf16[3,128,128], index: 1, kind: input, shape index: {}]   ;;  %s762_s2 = inlined_call_operand.hbm [shape: bf16[1,14,128], index: 2, kind: output, shape index: {0}]   ;;  %s763_s3 = inlined_call_operand.hbm [shape: f32[1,2,128], index: 3, kind: output, shape index: {1}]  }
   0x1   :  { %10 = vsyncpa [#allocation6], 0 }
   0x2   :  { %11 = vsyncpa [#allocation4], 0 }
   0x3   :  { %12 = vsyncpa [#allocation9], 0  ;;  %s681_s12 = smov [#allocation2]  }
   0x4   :  { %s18_s13 = sshll.u32 %s681_s12, 4  ;;  %s19_s13 = int_to_ptr.vmem [resolvable:$true] %s18_s13 }
   0x5   :  { %s601_s14 = scalar_lea.vmem %s19_s13, 128  ;;  %p606_p1 = scmp.lt.s32.totalorder %s19_s13, %s19_s13 }
   0x6   :  { %p602_p0 = scmp.ne.s32.totalorder %s19_s13, %s601_s14  ;;  %p607_p2 = scmp.lt.s32.totalorder %s601_s14, %s601_s14 }
   0x8   :  { %p608_p3 = por %p607_p2, %p606_p1 }
   0xa   :  { %p609_p4 = pnand %p608_p3, %p602_p0 }
   0xc   :  { %612 = shalt.err (!%p609_p4)
}
   0xd   :  { %s682_s15 = smov 64   ;;  %s683_s16 = smov 4  }
   0xe   :  { %24 = dma.hbm_to_vmem [thread:$0]  %s760_s0, 128, %s19_s13, [#allocation3], %s682_s15, %s682_s15, %s683_s16  }
   0xf   :  { %s684_s19 = smov [#allocation5]  }
  0x10   :  { %s30_s20 = sshll.u32 %s684_s19, 4  ;;  %s31_s20 = int_to_ptr.vmem [resolvable:$true] %s30_s20 }
  0x11   :  { %s621_s21 = scalar_lea.vmem %s31_s20, 3072  ;;  %p626_p6 = scmp.lt.s32.totalorder %s31_s20, %s31_s20 }
  0x12   :  { %p622_p5 = scmp.ne.s32.totalorder %s31_s20, %s621_s21  ;;  %p627_p7 = scmp.lt.s32.totalorder %s621_s21, %s621_s21 }
  0x14   :  { %p628_p8 = por %p627_p7, %p626_p6 }
  0x16   :  { %p629_p9 = pnand %p628_p8, %p622_p5 }
  0x18   :  { %632 = shalt.err (!%p629_p9)
}
  0x19   :  { %36 = dma.hbm_to_vmem [thread:$0]  %s761_s1, 3072, %s31_s20, [#allocation6], %s682_s15, %s682_s15, %s683_s16  }
  0x1a   :  { %673 = dma.done.wait [#allocation3], 128  }
  0x1b   :  { %674 = vsyncadd [#allocation3], 4294967168 }
  0x1c   :  { %675 = dma.done.wait [#allocation6], 3072  }
  0x1d   :  { %676 = vsyncadd [#allocation6], 4294964224  ;;  %v685_v0 = vmov 0.0   ;;  %vm686_vm0 = vmmov 0   ;;  %v568_v1 = vld [vmem:[#allocation5 + $0x78] sm:$0xff]   ;;  %v570_v3 = vld [vmem:[#allocation5 + $0x70] sm:$0xff]  }
  0x1e   :  { %500 = vmatprep.subr.bf16.mxu0 %v685_v0  ;;  %520 = vmatprep.subr.bf16.mxu1 %v685_v0  ;;  %v569_v2 = vld [vmem:[#allocation5 + $0x38] sm:$0xff]   ;;  %v571_v4 = vld [vmem:[#allocation5 + $0x30] sm:$0xff]   ;;  %v572_v5 = vld [vmem:[#allocation5 + $0x68] sm:$0xff]   ;;  %vm391_vm1 = vcmask 1045504   ;;  %s687_s0 = smov [#allocation7]  }
  0x1f   :  { %516 = vmatprep.mubr.msk.bf16.mxu0 %vm686_vm0, %v685_v0  ;;  %536 = vmatprep.mubr.msk.bf16.mxu1 %vm686_vm0, %v685_v0  ;;  %v573_v6 = vld [vmem:[#allocation5 + $0x28] sm:$0xff]   ;;  %v574_v7 = vld [vmem:[#allocation5 + $0x60] sm:$0xff]   ;;  %v576_v9 = vld [vmem:[#allocation5 + $0x58] sm:$0xff]   ;;  %s417_s1 = sshll.u32 %s687_s0, 4  ;;  %s418_s1 = int_to_ptr.vmem [resolvable:$true] %s417_s1 }
  0x20   :  { %501 = vmatpush3.bf16.msra.mxu0 %v568_v1  ;;  %521 = vmatpush3.bf16.msra.mxu1 %v569_v2  ;;  %v575_v8 = vld [vmem:[#allocation5 + $0x20] sm:$0xff]   ;;  %v577_v10 = vld [vmem:[#allocation5 + $0x18] sm:$0xff]   ;;  %v578_v12 = vld [vmem:[#allocation5 + $0x50] sm:$0xff]   ;;  %s633_s24 = scalar_lea.vmem %s418_s1, 128  ;;  %p638_p11 = scmp.lt.s32.totalorder %s418_s1, %s418_s1 }
  0x21   :  { %502 = vmatprep.subr.bf16.mxu0 %v685_v0  ;;  %522 = vmatprep.subr.bf16.mxu1 %v685_v0  ;;  %v584_v11 = vld [vmem:[#allocation2] sm:$0xff]   ;;  %v579_v13 = vld [vmem:[#allocation5 + $0x10] sm:$0xff]   ;;  %v580_v15 = vld [vmem:[#allocation5 + $0x48] sm:$0xff]   ;;  %p634_p10 = scmp.ne.s32.totalorder %s418_s1, %s633_s24  ;;  %p639_p12 = scmp.lt.s32.totalorder %s633_s24, %s633_s24 }
  0x22   :  { %v87_v14 = vshll.u32 %v584_v11, 16  ;;  %v581_v16 = vld [vmem:[#allocation5 + $0x8] sm:$0xff]   ;;  %v85_v17 = vshrl.u32 %v584_v11, 16  ;;  %v582_v19 = vld [vmem:[#allocation5 + $0x40] sm:$0xff]   ;;  %v585_v22 = vld [vmem:[#allocation5 + $0xb8] sm:$0xff]   ;;  %v288_v30 = vrot.slane %v584_v11, 1 }
  0x23   :  { %v583_v20 = vld [vmem:[#allocation5] sm:$0xff]   ;;  %v586_v23 = vld [vmem:[#allocation5 + $0xb0] sm:$0xff]   ;;  %v587_v24 = vld [vmem:[#allocation5 + $0xa8] sm:$0xff]   ;;  %p640_p13 = por %p639_p12, %p638_p11 }
  0x24   :  { %503 = vmatpush3.bf16.msra.mxu0 %v570_v3  ;;  %523 = vmatpush3.bf16.msra.mxu1 %v571_v4  ;;  %v89_v18 = vrot.slane %v87_v14, 1  ;;  %v588_v25 = vld [vmem:[#allocation5 + $0xa0] sm:$0xff]   ;;  %v589_v26 = vld [vmem:[#allocation5 + $0x98] sm:$0xff]   ;;  %v590_v27 = vld [vmem:[#allocation5 + $0x90] sm:$0xff]  }
  0x25   :  { %504 = vmatprep.subr.bf16.mxu0 %v685_v0  ;;  %524 = vmatprep.subr.bf16.mxu1 %v685_v0  ;;  %v591_v28 = vld [vmem:[#allocation5 + $0x88] sm:$0xff]   ;;  %v592_v29 = vld [vmem:[#allocation5 + $0x80] sm:$0xff]   ;;  %p641_p0 = pnand %p640_p13, %p634_p10 }
  0x26   :  { %v90_v21 = vor.u32 %v89_v18, %v85_v17 }
  0x28   :  { %505 = vmatpush3.bf16.msra.mxu0 %v572_v5  ;;  %525 = vmatpush3.bf16.msra.mxu1 %v573_v6 }
  0x29   :  { %506 = vmatprep.subr.bf16.mxu0 %v685_v0  ;;  %526 = vmatprep.subr.bf16.mxu1 %v685_v0 }
  0x2c   :  { %507 = vmatpush3.bf16.msra.mxu0 %v574_v7  ;;  %527 = vmatpush3.bf16.msra.mxu1 %v575_v8 }
  0x2d   :  { %508 = vmatprep.subr.bf16.mxu0 %v685_v0  ;;  %528 = vmatprep.subr.bf16.mxu1 %v685_v0 }
  0x30   :  { %509 = vmatpush3.bf16.msra.mxu0 %v576_v9  ;;  %529 = vmatpush3.bf16.msra.mxu1 %v577_v10 }
  0x31   :  { %510 = vmatprep.subr.bf16.mxu0 %v685_v0  ;;  %530 = vmatprep.subr.bf16.mxu1 %v685_v0 }
  0x34   :  { %511 = vmatpush3.bf16.msra.mxu0 %v578_v12  ;;  %531 = vmatpush3.bf16.msra.mxu1 %v579_v13 }
  0x35   :  { %512 = vmatprep.subr.bf16.mxu0 %v685_v0  ;;  %532 = vmatprep.subr.bf16.mxu1 %v685_v0 }
  0x38   :  { %513 = vmatpush3.bf16.msra.mxu0 %v580_v15  ;;  %533 = vmatpush3.bf16.msra.mxu1 %v581_v16 }
  0x39   :  { %514 = vmatprep.subr.bf16.mxu0 %v685_v0  ;;  %534 = vmatprep.subr.bf16.mxu1 %v685_v0 }
  0x3c   :  { %515 = vmatpush3.bf16.msra.mxu0 %v582_v19  ;;  %535 = vmatpush3.bf16.msra.mxu1 %v583_v20 }
  0x3d   :  { %540 = vmatprep.subr.bf16.mxu0 %v685_v0 }
  0x3f   :  { %517 = vmatmul.mubr.bf16.vlgmr.msra.gmra.mxu0 %v90_v21  ;;  %537 = vmatmul.mubr.bf16.vlgmr.msra.gmra.mxu1 %v584_v11 }
  0x40   :  { %541 = vmatpush3.bf16.msra.mxu0 %v585_v22  ;;  %556 = vmatprep.mubr.msk.bf16.mxu0 %vm686_vm0, %v685_v0 }
  0x41   :  { %542 = vmatprep.subr.bf16.mxu0 %v685_v0 }
  0x44   :  { %543 = vmatpush3.bf16.msra.mxu0 %v586_v23 }
  0x45   :  { %544 = vmatprep.subr.bf16.mxu0 %v685_v0 }
  0x48   :  { %545 = vmatpush3.bf16.msra.mxu0 %v587_v24 }
  0x49   :  { %546 = vmatprep.subr.bf16.mxu0 %v685_v0 }
  0x4c   :  { %547 = vmatpush3.bf16.msra.mxu0 %v588_v25 }
  0x4d   :  { %548 = vmatprep.subr.bf16.mxu0 %v685_v0 }
  0x50   :  { %549 = vmatpush3.bf16.msra.mxu0 %v589_v26 }
  0x51   :  { %550 = vmatprep.subr.bf16.mxu0 %v685_v0 }
  0x54   :  { %551 = vmatpush3.bf16.msra.mxu0 %v590_v27 }
  0x55   :  { %552 = vmatprep.subr.bf16.mxu0 %v685_v0 }
  0x58   :  { %553 = vmatpush3.bf16.msra.mxu0 %v591_v28 }
  0x59   :  { %554 = vmatprep.subr.bf16.mxu0 %v685_v0 }
  0x5c   :  { %555 = vmatpush3.bf16.msra.mxu0 %v592_v29 }
  0x5f   :  { %557 = vmatmul.mubr.bf16.vlgmr.msra.gmra.mxu0 %v288_v30 }
  0xff   :  { %v174_v31 = vpop.f32.mrf.mxu0  ;;  %v264_v32 = vpop.f32.mrf.mxu1 }
 0x100   :  { %v265_v39 = vadd.f32 %v264_v32, %v174_v31 }
 0x101   :  { %v518_v33 = vpop.f32.mrf.mxu0  ;;  %v538_v34 = vpop.f32.mrf.mxu1 }
 0x103   :  { %v177_v35 = vpop.f32.mrf.mxu0  ;;  %v267_v36 = vpop.f32.mrf.mxu1 }
 0x104   :  { %v268_v43 = vadd.f32 %v267_v36, %v177_v35 }
 0x105   :  { %v519_v37 = vpop.f32.mrf.mxu0  ;;  %v539_v38 = vpop.f32.mrf.mxu1 }
 0x11f   :  { %v372_v40 = vpop.f32.mrf.mxu0 }
 0x120   :  { %v379_v41 = vadd.f32 %v372_v40, %v265_v39 }
 0x121   :  { %v558_v42 = vpop.f32.mrf.mxu0 }
 0x122   :  { %v471_v44 = vpack.c.bf16 %v379_v41, %v379_v41  ;;  %v401_v51 = vmul.f32 %v379_v41, %v379_v41 }
 0x123   :  { %v375_v45 = vpop.f32.mrf.mxu0 }
 0x124   :  { %389 = vst [vmem:[#allocation7] sm:$0xf] %v471_v44  ;;  %v380_v46 = vadd.f32 %v375_v45, %v268_v43 }
 0x125   :  { %v559_v47 = vpop.f32.mrf.mxu0 }
 0x126   :  { %v472_v48 = vpack.c.bf16 %v380_v46, %v380_v46  ;;  %v392_v49 = vsel %vm391_vm1, %v380_v46, 0.0  ;;  %v402_v50 = vmul.f32 %v380_v46, %v380_v46 }
 0x127   :  { %v393_v52 = vadd.f32 %v392_v49, %v379_v41 }
 0x128   :  { %v403_v53 = vsel %vm391_vm1, %v402_v50, 0.0  ;;  %390 = vst [vmem:[#allocation7 + $0x4] sm:$0x7] %v472_v48 }
 0x129   :  { %v394_v54 = vrot.slane %v393_v52, 4  ;;  %v404_v55 = vadd.f32 %v403_v53, %v401_v51 }
 0x12a   :  { %644 = shalt.err (!%p641_p0)
}
 0x12b   :  { %423 = dma.vmem_to_hbm [thread:$0]  %s418_s1, 128, %s762_s2, [#allocation4], %s682_s15, %s682_s15, %s683_s16   ;;  %v395_v56 = vadd.f32 %v394_v54, %v393_v52  ;;  %v405_v57 = vrot.slane %v404_v55, 4 }
 0x12c   :  { %s688_s27 = smov [#allocation8]  }
 0x12d   :  { %v396_v58 = vrot.slane %v395_v56, 2  ;;  %v406_v59 = vadd.f32 %v405_v57, %v404_v55  ;;  %s430_s28 = sshll.u32 %s688_s27, 4  ;;  %s431_s28 = int_to_ptr.vmem [resolvable:$true] %s430_s28 }
 0x12e   :  { %s653_s29 = scalar_lea.vmem %s431_s28, 32  ;;  %p658_p2 = scmp.lt.s32.totalorder %s431_s28, %s431_s28 }
 0x12f   :  { %v397_v60 = vadd.f32 %v396_v58, %v395_v56  ;;  %v407_v61 = vrot.slane %v406_v59, 2  ;;  %p654_p1 = scmp.ne.s32.totalorder %s431_s28, %s653_s29  ;;  %p659_p3 = scmp.lt.s32.totalorder %s653_s29, %s653_s29 }
 0x131   :  { %v398_v62 = vrot.slane %v397_v60, 1  ;;  %v408_v63 = vadd.f32 %v407_v61, %v406_v59  ;;  %p660_p4 = por %p659_p3, %p658_p2 }
 0x133   :  { %v399_v0 = vadd.f32 %v398_v62, %v397_v60  ;;  %v409_v1 = vrot.slane %v408_v63, 1  ;;  %p661_p5 = pnand %p660_p4, %p654_p1 }
 0x135   :  { %400 = vst [vmem:[#allocation8] sm:$0x1] %v399_v0  ;;  %v410_v2 = vadd.f32 %v409_v1, %v408_v63 }
 0x137   :  { %411 = vst [vmem:[#allocation8 + $0x1] sm:$0x1] %v410_v2 }
 0x138   :  { %664 = shalt.err (!%p661_p5)
}
 0x139   :  { %433 = dma.vmem_to_hbm [thread:$0]  %s431_s28, 32, %s763_s3, [#allocation9]  }
 0x13a   :  { %677 = dma.done.wait [#allocation4], 128  }
 0x13b   :  { %678 = vsyncadd [#allocation4], 4294967168 }
 0x13c   :  { %679 = dma.done.wait [#allocation9], 32  }
 0x13d   :  { %680 = vsyncadd [#allocation9], 4294967264 }
 0x13e   :  { %440 = vsyncpa [#allocation3], 1 }
 0x13f   :  { %441 = vsyncpa [#allocation6], 1 }
 0x140   :  { %442 = vsyncpa [#allocation4], 1 }
 0x141   :  { %443 = vsyncpa [#allocation9], 1 }

</bundles_post_ra>
